<compile_context>
chip_gen: v7x
topology: tpu7x:2x2x1
jax: 0.10.0
libtpu: 0.0.40
codegen_flags: <defaults>
</compile_context>

<pallas_src>
import jax
import jax.numpy as jnp
from jax.experimental import pallas as pl
from jax.experimental.pallas import tpu as pltpu

_EPS = 1e-12                      # torch F.normalize default eps
_VMEM_BUDGET = 40 * (1 << 20)     # keep headroom under v7x's 64 MiB VMEM
_ONEHOT_N_LIMIT = 4096            # padded table rows above this -> fallback path


def _ceil_to(x, m):
    return ((int(x) + m - 1) // m) * m


def _l2_normalize(x):
    # x / max(||x||_2, eps)  ==  x * rsqrt(max(sum(x^2), eps^2))  (torch-equivalent)
    x32 = x.astype(jnp.float32)
    ss = jnp.sum(x32 * x32, axis=1, keepdims=True)
    return x32 * jax.lax.rsqrt(jnp.maximum(ss, _EPS * _EPS))


def _pad_table_transposed(tbl, n_pad, d_pad):
    """(N, D) f32 table -> zero-padded (d_pad, n_pad) transposed table."""
    n, d = tbl.shape
    out = jnp.zeros((d_pad, n_pad), jnp.float32)
    return out.at[:d, :n].set(tbl.T)


def _onehot_vmem_estimate(d_pad, nu_pad, nj_pad, tile_e):
    tbl = 4 * d_pad * (nu_pad + nj_pad)                   # resident tables
    stream = 2 * 4 * tile_e * 3                           # dbl-buffered iu/iv + out
    work = 4 * tile_e * (nu_pad + nj_pad + 3 * d_pad)     # one-hots + ut + vt + acc
    return 2 * tbl + stream + work                        # tables conservatively x2


def _choose_tile_e(E, tile_e):
    e_ceil = _ceil_to(max(E, 1), 128)
    tile_e = max(128, (int(tile_e) // 128) * 128)
    tile_e = min(tile_e, e_ceil)
    # Keep at least 2 grid steps when possible so the "parallel" edge axis
    # actually spans both v7x TensorCores.
    if e_ceil >= 256:
        tile_e = min(tile_e, max(128, (e_ceil // 2 // 128) * 128))
    return tile_e


def _onehot_edge_dot_kernel(usr_t_ref, job_t_ref, iu_ref, iv_ref, o_ref):
    # usr_t_ref: (D_pad, Nu_pad) normalized user table, VMEM-resident.
    # job_t_ref: (D_pad, Nj_pad) normalized job table,  VMEM-resident.
    # iu_ref / iv_ref: (1, tile_e) int32 endpoint indices for this edge tile.
    # o_ref: (1, tile_e) f32 scores (lane-dense output).
    iu = iu_ref[...]
    iv = iv_ref[...]
    nu = usr_t_ref.shape[1]
    nj = job_t_ref.shape[1]
    te = iu.shape[1]

    # In-kernel gather via one-hot selection matmul (MXU is otherwise idle).
    oh_u = jnp.where(
        jax.lax.broadcasted_iota(jnp.int32, (nu, te), 0) == iu, 1.0, 0.0)
    oh_v = jnp.where(
        jax.lax.broadcasted_iota(jnp.int32, (nj, te), 0) == iv, 1.0, 0.0)
    ut = jnp.dot(usr_t_ref[...], oh_u, preferred_element_type=jnp.float32)
    vt = jnp.dot(job_t_ref[...], oh_v, preferred_element_type=jnp.float32)

    # Feature reduce in sublane groups of 8 (keeps live vregs small).
    d_pad = ut.shape[0]
    acc = ut[0:8] * vt[0:8]
    for s in range(8, d_pad, 8):
        acc = acc + ut[s:s + 8] * vt[s:s + 8]
    o_ref[...] = jnp.sum(acc, axis=0, keepdims=True)


def _gathered_edge_dot_kernel(ut_ref, vt_ref, o_ref):
    # Fallback path: ut/vt are pre-gathered normalized embeddings, (D, tile_e).
    u = ut_ref[...].astype(jnp.float32)
    v = vt_ref[...].astype(jnp.float32)
    o_ref[...] = jnp.sum(u * v, axis=0, keepdims=True)


def model_forward(x_user, x_job, edge_label_index, *, tile_e=8192):
    """Pure L2-normalized dot-product link predictor (Pallas TPU)."""
    E = int(edge_label_index.shape[1])
    if E == 0:                      # degenerate case: no edges -> empty scores
        return jnp.zeros((0,), jnp.float32)

    # Fold the inverse L2 norms into the tables once (O(N*D)).
    usr_n = _l2_normalize(x_user)
    job_n = _l2_normalize(x_job)
    D = usr_n.shape[1]

    tile_e = _choose_tile_e(E, tile_e)

    idx_u = edge_label_index[0].astype(jnp.int32)
    idx_v = edge_label_index[1].astype(jnp.int32)

    nu_pad = _ceil_to(max(x_user.shape[0], 1), 128)
    nj_pad = _ceil_to(max(x_job.shape[0], 1), 128)
    d_pad = _ceil_to(max(D, 1), 8)

    # Decide: in-kernel one-hot gather (tables VMEM-resident) vs XLA-gather
    # fallback, with an explicit VMEM budget (v7x has only 64 MiB).
    use_onehot = nu_pad <= _ONEHOT_N_LIMIT and nj_pad <= _ONEHOT_N_LIMIT
    if use_onehot:
        while (_onehot_vmem_estimate(d_pad, nu_pad, nj_pad, tile_e) > _VMEM_BUDGET
               and tile_e > 512):
            tile_e = max(512, ((tile_e // 2) // 128) * 128)
        use_onehot = (_onehot_vmem_estimate(d_pad, nu_pad, nj_pad, tile_e)
                      <= _VMEM_BUDGET)

    # Pad only the O(E) int32 indices (never (E, D) arrays).
    e_pad = _ceil_to(E, tile_e)
    if e_pad != E:
        idx_u = jnp.pad(idx_u, (0, e_pad - E))
        idx_v = jnp.pad(idx_v, (0, e_pad - E))
    grid = (e_pad // tile_e,)

    cp_kwargs = dict(dimension_semantics=("parallel",))
    if use_onehot:
        vmem_est = _onehot_vmem_estimate(d_pad, nu_pad, nj_pad, tile_e)
        if vmem_est > 12 * (1 << 20):
            cp_kwargs["vmem_limit_bytes"] = min(
                _ceil_to(vmem_est + (4 << 20), 1 << 20), 48 * (1 << 20))
    compiler_params = pltpu.CompilerParams(**cp_kwargs)

    if use_onehot:
        usr_t = _pad_table_transposed(usr_n, nu_pad, d_pad)   # (d_pad, nu_pad)
        job_t = _pad_table_transposed(job_n, nj_pad, d_pad)   # (d_pad, nj_pad)
        out = pl.pallas_call(
            _onehot_edge_dot_kernel,
            out_shape=jax.ShapeDtypeStruct((1, e_pad), jnp.float32),
            grid_spec=pltpu.PrefetchScalarGridSpec(
                num_scalar_prefetch=0,
                grid=grid,
                in_specs=[
                    pl.BlockSpec((d_pad, nu_pad), lambda i: (0, 0)),  # resident
                    pl.BlockSpec((d_pad, nj_pad), lambda i: (0, 0)),  # resident
                    pl.BlockSpec((1, tile_e), lambda i: (0, i)),
                    pl.BlockSpec((1, tile_e), lambda i: (0, i)),
                ],
                out_specs=pl.BlockSpec((1, tile_e), lambda i: (0, i)),
            ),
            compiler_params=compiler_params,
        )(usr_t, job_t, idx_u[None, :], idx_v[None, :])
    else:
        # TODO(synk): for huge tables, gather pages via manual in-kernel DMA
        # instead of this XLA-gather fallback (extra HBM round trip).
        u_t = jnp.take(usr_n, idx_u, axis=0).T   # (D, e_pad), edges on lanes
        v_t = jnp.take(job_n, idx_v, axis=0).T
        out = pl.pallas_call(
            _gathered_edge_dot_kernel,
            out_shape=jax.ShapeDtypeStruct((1, e_pad), jnp.float32),
            grid_spec=pltpu.PrefetchScalarGridSpec(
                num_scalar_prefetch=0,
                grid=grid,
                in_specs=[
                    pl.BlockSpec((D, tile_e), lambda i: (0, i)),
                    pl.BlockSpec((D, tile_e), lambda i: (0, i)),
                ],
                out_specs=pl.BlockSpec((1, tile_e), lambda i: (0, i)),
            ),
            compiler_params=compiler_params,
        )(u_t, v_t)

    return out[0, :E]


def _reference(x_user, x_job, edge_label_index):
    def l2norm(x):
        n = jnp.sqrt(jnp.sum(x * x, axis=1, keepdims=True))
        return x / jnp.maximum(n, _EPS)

    usr = l2norm(x_user)
    job = l2norm(x_job)
    u = usr[edge_label_index[0]]
    v = job[edge_label_index[1]]
    return jnp.sum(u * v, axis=1)


if __name__ == "__main__":
    key = jax.random.PRNGKey(0)
    k_u, k_j, k_e0, k_e1 = jax.random.split(key, 4)

    num_users, num_jobs, dim, num_edges = 16, 12, 32, 8

    x_user = jax.random.normal(k_u, (num_users, dim), dtype=jnp.float32)
    x_job = jax.random.normal(k_j, (num_jobs, dim), dtype=jnp.float32)
    edge_label_index = jnp.stack([
        jax.random.randint(k_e0, (num_edges,), 0, num_users, dtype=jnp.int32),
        jax.random.randint(k_e1, (num_edges,), 0, num_jobs, dtype=jnp.int32),
    ], axis=0)

    fwd = jax.jit(model_forward)
    scores = fwd(x_user, x_job, edge_label_index)
    scores = jax.block_until_ready(scores)

    ref = _reference(x_user, x_job, edge_label_index)
    assert scores.shape == (num_edges,)
    assert jnp.allclose(scores, ref, atol=1e-5, rtol=1e-5), (scores, ref)

    print("KERNEL_OK")
</pallas_src>

<mosaic_0001>
module attributes {stable_mosaic.version = 11 : i64} {
  func.func @_onehot_edge_dot_kernel(%arg0: i32, %arg1: memref<32x128xf32, #tpu.memory_space<vmem>>, %arg2: memref<32x128xf32, #tpu.memory_space<vmem>>, %arg3: memref<1x128xi32, #tpu.memory_space<vmem>>, %arg4: memref<1x128xi32, #tpu.memory_space<vmem>>, %arg5: memref<1x128xf32, #tpu.memory_space<vmem>>) attributes {dimension_semantics = [#tpu.dimension_semantics<parallel>], iteration_bounds = array<i64: 1>, scalar_prefetch = 0 : i64, scratch_operands = 0 : i64, tpu.core_type = #tpu.core_type<tc>, window_params = [{pipeline_mode = #tpu.pipeline_mode<synchronous>, transform_indices = @transform_0, window_bounds = array<i64: 32, 128>}, {pipeline_mode = #tpu.pipeline_mode<synchronous>, transform_indices = @transform_1, window_bounds = array<i64: 32, 128>}, {transform_indices = @transform_2, window_bounds = array<i64: 1, 128>}, {transform_indices = @transform_3, window_bounds = array<i64: 1, 128>}, {transform_indices = @transform_4, window_bounds = array<i64: 1, 128>}]} {
    %c0 = arith.constant 0 : index
    %c0_0 = arith.constant 0 : index
    %0 = vector.load %arg3[%c0, %c0_0] : memref<1x128xi32, #tpu.memory_space<vmem>>, vector<1x128xi32>
    %c0_1 = arith.constant 0 : index
    %c0_2 = arith.constant 0 : index
    %1 = vector.load %arg4[%c0_1, %c0_2] : memref<1x128xi32, #tpu.memory_space<vmem>>, vector<1x128xi32>
    %2 = tpu.iota {dimensions = array<i32: 0>} : vector<128x128xi32>
    %3 = vector.broadcast %0 : vector<1x128xi32> to vector<128x128xi32>
    %4 = arith.cmpi eq, %2, %3 : vector<128x128xi32>
    %cst = arith.constant 1.000000e+00 : f32
    %cst_3 = arith.constant 0.000000e+00 : f32
    %5 = vector.broadcast %cst : f32 to vector<128x128xf32>
    %6 = vector.broadcast %cst_3 : f32 to vector<128x128xf32>
    %7 = arith.select %4, %5, %6 : vector<128x128xi1>, vector<128x128xf32>
    %8 = tpu.iota {dimensions = array<i32: 0>} : vector<128x128xi32>
    %9 = vector.broadcast %1 : vector<1x128xi32> to vector<128x128xi32>
    %10 = arith.cmpi eq, %8, %9 : vector<128x128xi32>
    %cst_4 = arith.constant 1.000000e+00 : f32
    %cst_5 = arith.constant 0.000000e+00 : f32
    %11 = vector.broadcast %cst_4 : f32 to vector<128x128xf32>
    %12 = vector.broadcast %cst_5 : f32 to vector<128x128xf32>
    %13 = arith.select %10, %11, %12 : vector<128x128xi1>, vector<128x128xf32>
    %c0_6 = arith.constant 0 : index
    %c0_7 = arith.constant 0 : index
    %14 = vector.load %arg1[%c0_6, %c0_7] : memref<32x128xf32, #tpu.memory_space<vmem>>, vector<32x128xf32>
    %cst_8 = arith.constant dense<0.000000e+00> : vector<32x128xf32>
    %15 = tpu.matmul %14, %7, %cst_8 {dimension_numbers = #tpu.dot_dimension_numbers<[1], [0], [0], [1], [0, 0, 1, 1], [], []>} : vector<32x128xf32>, vector<128x128xf32>, vector<32x128xf32> -> vector<32x128xf32>
    %c0_9 = arith.constant 0 : index
    %c0_10 = arith.constant 0 : index
    %16 = vector.load %arg2[%c0_9, %c0_10] : memref<32x128xf32, #tpu.memory_space<vmem>>, vector<32x128xf32>
    %cst_11 = arith.constant dense<0.000000e+00> : vector<32x128xf32>
    %17 = tpu.matmul %16, %13, %cst_11 {dimension_numbers = #tpu.dot_dimension_numbers<[1], [0], [0], [1], [0, 0, 1, 1], [], []>} : vector<32x128xf32>, vector<128x128xf32>, vector<32x128xf32> -> vector<32x128xf32>
    %18 = vector.extract_strided_slice %15 {offsets = [0, 0], sizes = [8, 128], strides = [1, 1]} : vector<32x128xf32> to vector<8x128xf32>
    %19 = vector.extract_strided_slice %17 {offsets = [0, 0], sizes = [8, 128], strides = [1, 1]} : vector<32x128xf32> to vector<8x128xf32>
    %20 = arith.mulf %18, %19 : vector<8x128xf32>
    %21 = vector.extract_strided_slice %15 {offsets = [8, 0], sizes = [8, 128], strides = [1, 1]} : vector<32x128xf32> to vector<8x128xf32>
    %22 = vector.extract_strided_slice %17 {offsets = [8, 0], sizes = [8, 128], strides = [1, 1]} : vector<32x128xf32> to vector<8x128xf32>
    %23 = arith.mulf %21, %22 : vector<8x128xf32>
    %24 = arith.addf %20, %23 : vector<8x128xf32>
    %25 = vector.extract_strided_slice %15 {offsets = [16, 0], sizes = [8, 128], strides = [1, 1]} : vector<32x128xf32> to vector<8x128xf32>
    %26 = vector.extract_strided_slice %17 {offsets = [16, 0], sizes = [8, 128], strides = [1, 1]} : vector<32x128xf32> to vector<8x128xf32>
    %27 = arith.mulf %25, %26 : vector<8x128xf32>
    %28 = arith.addf %24, %27 : vector<8x128xf32>
    %29 = vector.extract_strided_slice %15 {offsets = [24, 0], sizes = [8, 128], strides = [1, 1]} : vector<32x128xf32> to vector<8x128xf32>
    %30 = vector.extract_strided_slice %17 {offsets = [24, 0], sizes = [8, 128], strides = [1, 1]} : vector<32x128xf32> to vector<8x128xf32>
    %31 = arith.mulf %29, %30 : vector<8x128xf32>
    %32 = arith.addf %28, %31 : vector<8x128xf32>
    %cst_12 = arith.constant dense<0.000000e+00> : vector<128xf32>
    %33 = vector.multi_reduction <add>, %32, %cst_12 [0] : vector<8x128xf32> to vector<128xf32>
    %34 = vector.shape_cast %33 : vector<128xf32> to vector<1x128xf32>
    %c0_13 = arith.constant 0 : index
    %c0_14 = arith.constant 0 : index
    %35 = vector.load %arg5[%c0_13, %c0_14] : memref<1x128xf32, #tpu.memory_space<vmem>>, vector<1x128xf32>
    tpu.vector_store %arg5[%c0_13, %c0_14], %34 {strides = array<i32>} : memref<1x128xf32, #tpu.memory_space<vmem>>, vector<1x128xf32>,
    return
  }
  func.func @transform_0(%arg0: i32) -> (i32, i32) {
    %c0_i32 = arith.constant 0 : i32
    %c0_i32_0 = arith.constant 0 : i32
    %c0_i32_1 = arith.constant 0 : i32
    return %c0_i32, %c0_i32_0 : i32, i32
  }
  func.func @transform_1(%arg0: i32) -> (i32, i32) {
    %c0_i32 = arith.constant 0 : i32
    %c0_i32_0 = arith.constant 0 : i32
    %c0_i32_1 = arith.constant 0 : i32
    return %c0_i32, %c0_i32_0 : i32, i32
  }
  func.func @transform_2(%arg0: i32) -> (i32, i32) {
    %c0_i32 = arith.constant 0 : i32
    %c0_i32_0 = arith.constant 0 : i32
    return %c0_i32, %arg0 : i32, i32
  }
  func.func @transform_3(%arg0: i32) -> (i32, i32) {
    %c0_i32 = arith.constant 0 : i32
    %c0_i32_0 = arith.constant 0 : i32
    return %c0_i32, %arg0 : i32, i32
  }
  func.func @transform_4(%arg0: i32) -> (i32, i32) {
    %c0_i32 = arith.constant 0 : i32
    %c0_i32_0 = arith.constant 0 : i32
    return %c0_i32, %arg0 : i32, i32
  }
}

</mosaic_0001>

<bundles_post_ra>
// kernel: model_forward.1
= control target key start
LH: loop header
LB: loop body
LE: loop exit
PB: predicated region body
PF: predicated region fallthrough
CT: control target
= control target key end

     0   :  { %v19_v0 = vlaneseq  ;;  %v519_v11 = vmov 1.0|1.0   ;;  %s733_s2 = inlined_call_operand.vmem [shape: s32[1,128], index: 2, kind: input, shape index: {}]   ;;  %s734_s3 = inlined_call_operand.vmem [shape: s32[1,128], index: 3, kind: input, shape index: {}]   ;;  %s735_s0 = inlined_call_operand.vmem [shape: f32[32,128], index: 0, kind: input, shape index: {}]   ;;  %s736_s1 = inlined_call_operand.vmem [shape: f32[32,128], index: 1, kind: input, shape index: {}]   ;;  %s737_s4 = inlined_call_operand.vmem [shape: f32[1,128], index: 4, kind: output, shape index: {}]  }
   0x1   :  { %v548_v1 = vld [vmem:[%s733_s2] ss:$0 sm:$0xff]  ;;  %v109_v30 = vld [vmem:[%s735_s0 + $0x8] sm:$0xff]  ;;  %v110_v32 = vld [vmem:[%s735_s0 + $0x10] sm:$0xff] }
   0x2   :  { %v108_v2 = vld [vmem:[%s735_s0] sm:$0xff]  ;;  %v553_v3 = vshrl.u32 %v19_v0, 7  ;;  %v198_v31 = vld [vmem:[%s736_s1 + $0x8] sm:$0xff]  ;;  %v199_v33 = vld [vmem:[%s736_s1 + $0x10] sm:$0xff] }
   0x3   :  { %v558_v4 = vld [vmem:[%s734_s3] ss:$0 sm:$0xff]  ;;  %410 = vmatprep.mubr.f32.mxu0 %v108_v2  ;;  %v111_v34 = vld [vmem:[%s735_s0 + $0x18] sm:$0xff] }
   0x4   :  { %v197_v5 = vld [vmem:[%s736_s1] sm:$0xff]  ;;  %v21_v6 = vadd.s32 8, %v553_v3  ;;  %vm40_vm0 = vcmp.eq.s32.totalorder %v553_v3, %v548_v1  ;;  %v22_v7 = vadd.s32 16, %v553_v3  ;;  %vm76_vm1 = vcmp.eq.s32.totalorder %v553_v3, %v558_v4  ;;  %v200_v35 = vld [vmem:[%s736_s1 + $0x18] sm:$0xff] }
   0x5   :  { %448 = vmatprep.mubr.f32.mxu1 %v197_v5  ;;  %v23_v8 = vadd.s32 24, %v553_v3  ;;  %v24_v9 = vadd.s32 32, %v553_v3  ;;  %v25_v10 = vadd.s32 40, %v553_v3  ;;  %v26_v12 = vadd.s32 48, %v553_v3 }
   0x6   :  { %vm41_vm2 = vcmp.eq.s32.totalorder %v21_v6, %v548_v1  ;;  %vm77_vm3 = vcmp.eq.s32.totalorder %v21_v6, %v558_v4  ;;  %vm42_vm4 = vcmp.eq.s32.totalorder %v22_v7, %v548_v1  ;;  %vm78_vm7 = vcmp.eq.s32.totalorder %v22_v7, %v558_v4 }
   0x7   :  { %vm454_vm5 = vmpackc.low %vm41_vm2, %vm40_vm0  ;;  %vm43_vm6 = vcmp.eq.s32.totalorder %v23_v8, %v548_v1  ;;  %vm79_vm8 = vcmp.eq.s32.totalorder %v23_v8, %v558_v4  ;;  %vm44_vm10 = vcmp.eq.s32.totalorder %v24_v9, %v548_v1  ;;  %vm45_vm11 = vcmp.eq.s32.totalorder %v25_v10, %v548_v1 }
   0x8   :  { %455 = vmatprep.subr.msk.bf16.mxu0 %vm454_vm5, %v519_v11  ;;  %vm486_vm9 = vmpackc.low %vm77_vm3, %vm76_vm1  ;;  %v27_v13 = vadd.s32 56, %v553_v3  ;;  %vm80_vm13 = vcmp.eq.s32.totalorder %v24_v9, %v558_v4  ;;  %vm81_vm14 = vcmp.eq.s32.totalorder %v25_v10, %v558_v4  ;;  %vm46_vm2 = vcmp.eq.s32.totalorder %v26_v12, %v548_v1 }
   0x9   :  { %487 = vmatprep.subr.msk.bf16.mxu1 %vm486_vm9, %v519_v11  ;;  %457 = vmatpush3.bf16.msk.msra.mxu0 %vm454_vm5, %v519_v11  ;;  %vm458_vm12 = vmpackc.low %vm43_vm6, %vm42_vm4  ;;  %v28_v16 = vadd.s32 64, %v553_v3  ;;  %v29_v17 = vadd.s32 72, %v553_v3  ;;  %vm82_vm4 = vcmp.eq.s32.totalorder %v26_v12, %v558_v4  ;;  %v30_v20 = vadd.s32 80, %v553_v3 }
   0xa   :  { %489 = vmatpush3.bf16.msk.msra.mxu1 %vm486_vm9, %v519_v11  ;;  %459 = vmatprep.subr.msk.bf16.mxu0 %vm458_vm12, %v519_v11  ;;  %vm490_vm15 = vmpackc.low %vm79_vm8, %vm78_vm7  ;;  %vm47_vm3 = vcmp.eq.s32.totalorder %v27_v13, %v548_v1  ;;  %vm83_vm5 = vcmp.eq.s32.totalorder %v27_v13, %v558_v4  ;;  %v31_v21 = vadd.s32 88, %v553_v3  ;;  %v32_v24 = vadd.s32 96, %v553_v3 }
   0xb   :  { %491 = vmatprep.subr.msk.bf16.mxu1 %vm490_vm15, %v519_v11  ;;  %vm594_vm0 = vmpackc.low %vm45_vm11, %vm44_vm10  ;;  %vm48_vm8 = vcmp.eq.s32.totalorder %v28_v16, %v548_v1  ;;  %vm49_vm9 = vcmp.eq.s32.totalorder %v29_v17, %v548_v1  ;;  %vm84_vm10 = vcmp.eq.s32.totalorder %v28_v16, %v558_v4  ;;  %vm85_vm11 = vcmp.eq.s32.totalorder %v29_v17, %v558_v4 }
   0xc   :  { %vm598_vm1 = vmpackc.low %vm81_vm14, %vm80_vm13  ;;  %vm50_vm14 = vcmp.eq.s32.totalorder %v30_v20, %v548_v1  ;;  %v33_v25 = vadd.s32 104, %v553_v3  ;;  %v34_v28 = vadd.s32 112, %v553_v3  ;;  %v35_v29 = vadd.s32 120, %v553_v3 }
   0xd   :  { %461 = vmatpush3.bf16.msk.msra.mxu0 %vm458_vm12, %v519_v11  ;;  %vm616_vm6 = vmpackc.low %vm47_vm3, %vm46_vm2 }
   0xe   :  { %493 = vmatpush3.bf16.msk.msra.mxu1 %vm490_vm15, %v519_v11  ;;  %463 = vmatprep.subr.msk.bf16.mxu0 %vm594_vm0, %v519_v11  ;;  %vm620_vm7 = vmpackc.low %vm83_vm5, %vm82_vm4  ;;  %vm51_vm15 = vcmp.eq.s32.totalorder %v31_v21, %v548_v1  ;;  %vm52_vm4 = vcmp.eq.s32.totalorder %v32_v24, %v548_v1  ;;  %vm53_vm5 = vcmp.eq.s32.totalorder %v33_v25, %v548_v1 }
   0xf   :  { %495 = vmatprep.subr.msk.bf16.mxu1 %vm598_vm1, %v519_v11  ;;  %vm642_vm12 = vmpackc.low %vm49_vm9, %vm48_vm8 }
  0x10   :  { %vm646_vm13 = vmpackc.low %vm85_vm11, %vm84_vm10  ;;  %vm54_vm10 = vcmp.eq.s32.totalorder %v34_v28, %v548_v1  ;;  %vm55_vm11 = vcmp.eq.s32.totalorder %v35_v29, %v548_v1 }
  0x11   :  { %465 = vmatpush3.bf16.msk.msra.mxu0 %vm594_vm0, %v519_v11  ;;  %vm86_vm0 = vcmp.eq.s32.totalorder %v30_v20, %v558_v4  ;;  %vm668_vm2 = vmpackc.low %vm51_vm15, %vm50_vm14 }
  0x12   :  { %497 = vmatpush3.bf16.msk.msra.mxu1 %vm598_vm1, %v519_v11  ;;  %467 = vmatprep.subr.msk.bf16.mxu0 %vm616_vm6, %v519_v11  ;;  %vm87_vm1 = vcmp.eq.s32.totalorder %v31_v21, %v558_v4  ;;  %vm478_vm8 = vmpackc.low %vm53_vm5, %vm52_vm4 }
  0x13   :  { %499 = vmatprep.subr.msk.bf16.mxu1 %vm620_vm7, %v519_v11  ;;  %vm672_vm3 = vmpackc.low %vm87_vm1, %vm86_vm0 }
  0x14   :  { %vm482_vm14 = vmpackc.low %vm55_vm11, %vm54_vm10 }
  0x15   :  { %469 = vmatpush3.bf16.msk.msra.mxu0 %vm616_vm6, %v519_v11  ;;  %vm88_vm6 = vcmp.eq.s32.totalorder %v32_v24, %v558_v4 }
  0x16   :  { %501 = vmatpush3.bf16.msk.msra.mxu1 %vm620_vm7, %v519_v11  ;;  %471 = vmatprep.subr.msk.bf16.mxu0 %vm642_vm12, %v519_v11  ;;  %vm89_vm7 = vcmp.eq.s32.totalorder %v33_v25, %v558_v4 }
  0x17   :  { %503 = vmatprep.subr.msk.bf16.mxu1 %vm646_vm13, %v519_v11  ;;  %vm510_vm9 = vmpackc.low %vm89_vm7, %vm88_vm6 }
  0x19   :  { %473 = vmatpush3.bf16.msk.msra.mxu0 %vm642_vm12, %v519_v11  ;;  %vm90_vm12 = vcmp.eq.s32.totalorder %v34_v28, %v558_v4 }
  0x1a   :  { %505 = vmatpush3.bf16.msk.msra.mxu1 %vm646_vm13, %v519_v11  ;;  %475 = vmatprep.subr.msk.bf16.mxu0 %vm668_vm2, %v519_v11  ;;  %vm91_vm13 = vcmp.eq.s32.totalorder %v35_v29, %v558_v4 }
  0x1b   :  { %507 = vmatprep.subr.msk.bf16.mxu1 %vm672_vm3, %v519_v11  ;;  %vm514_vm15 = vmpackc.low %vm91_vm13, %vm90_vm12 }
  0x1d   :  { %477 = vmatpush3.bf16.msk.msra.mxu0 %vm668_vm2, %v519_v11 }
  0x1e   :  { %509 = vmatpush3.bf16.msk.msra.mxu1 %vm672_vm3, %v519_v11  ;;  %479 = vmatprep.subr.msk.bf16.mxu0 %vm478_vm8, %v519_v11 }
  0x1f   :  { %511 = vmatprep.subr.msk.bf16.mxu1 %vm510_vm9, %v519_v11 }
  0x21   :  { %481 = vmatpush3.bf16.msk.msra.mxu0 %vm478_vm8, %v519_v11 }
  0x22   :  { %513 = vmatpush3.bf16.msk.msra.mxu1 %vm510_vm9, %v519_v11  ;;  %483 = vmatprep.subr.msk.bf16.mxu0 %vm482_vm14, %v519_v11 }
  0x23   :  { %515 = vmatprep.subr.msk.bf16.mxu1 %vm514_vm15, %v519_v11 }
  0x25   :  { %485 = vmatpush3.bf16.msk.msra.mxu0 %vm482_vm14, %v519_v11 }
  0x26   :  { %517 = vmatpush3.bf16.msk.msra.mxu1 %vm514_vm15, %v519_v11 }
  0x28   :  { %411 = vmatmul.mubr.f32.vlgmr.msra.gmra.mrb[0].mxu0 %v109_v30 }
  0x29   :  { %449 = vmatmul.mubr.f32.vlgmr.msra.gmra.mrb[0].mxu1 %v198_v31  ;;  %413 = vmatprep.mubr.f32.mxu0 %v110_v32 }
  0x2a   :  { %451 = vmatprep.mubr.f32.mxu1 %v199_v33 }
  0x2c   :  { %414 = vmatmul.mubr.f32.gmra.mrb[2].mxu0 %v111_v34 }
  0x2d   :  { %452 = vmatmul.mubr.f32.gmra.mrb[2].mxu1 %v200_v35 }
  0xfb   :  { %v412_v36 = vpop.f32.mrb[0].mxu0 }
  0xfc   :  { %v450_v37 = vpop.f32.mrb[0].mxu1  ;;  %v178_v38 = vpop.f32.mrb[1].mxu0 }
  0xfd   :  { %v287_v39 = vmul.f32 %v450_v37, %v412_v36  ;;  %v267_v40 = vpop.f32.mrb[1].mxu1 }
  0xfe   :  { %v286_v41 = vmul.f32 %v267_v40, %v178_v38 }
  0xff   :  { %v415_v42 = vpop.f32.mrb[2].mxu0 }
 0x100   :  { %v288_v43 = vadd.f32 %v287_v39, %v286_v41  ;;  %v453_v44 = vpop.f32.mrb[2].mxu1  ;;  %v188_v45 = vpop.f32.mrb[3].mxu0 }
 0x101   :  { %v291_v46 = vmul.f32 %v453_v44, %v415_v42  ;;  %v277_v47 = vpop.f32.mrb[3].mxu1 }
 0x102   :  { %v289_v48 = vmul.f32 %v277_v47, %v188_v45 }
 0x104   :  { %v290_v49 = vadd.f32 %v289_v48, %v288_v43 }
 0x106   :  { %v292_v50 = vadd.f32 %v291_v46, %v290_v49 }
 0x108   :  { %v293_v51 = vrot.slane %v292_v50, 4 }
 0x10a   :  { %v294_v52 = vadd.f32 %v293_v51, %v292_v50 }
 0x10c   :  { %v295_v53 = vrot.slane %v294_v52, 2 }
 0x10e   :  { %v296_v54 = vadd.f32 %v295_v53, %v294_v52 }
 0x110   :  { %v297_v55 = vrot.slane %v296_v54, 1 }
 0x112   :  { %v298_v56 = vadd.f32 %v297_v55, %v296_v54 }
 0x114   :  { %299 = vst [vmem:[%s737_s4] sm:$0x1] %v298_v56 }

</bundles_post_ra>
